<compile_context>
chip_gen: v5e
topology: v5e:2x2
jax: 0.10.0
libtpu: 0.0.40
codegen_flags: <defaults>
</compile_context>

<pallas_src>
import jax
import jax.numpy as jnp
from jax.experimental import pallas as pl
from jax.experimental.pallas import tpu as pltpu

MAX_ALPHA = 0.3
MAX_BETA = 0.1
MAX_LOSS_ESTIMATE = 3.0
GAMMA = 0.1
TEMP = 4.0


def _make_loss_kernel(num_areas):
    inv_temp = 1.0 / TEMP

    def kernel(labels_ref, out_ref, teacher_ref, *refs):
        # labels_ref : (BLOCK_B, 1) int32   (-1 marks padded rows)
        # out_ref    : (BLOCK_B, C) native dtype
        # teacher_ref: (BLOCK_B, C) native dtype
        # refs[:A]   : A x (BLOCK_B, C) native dtype (area heads)
        # refs[A]    : (1, 1, 128) f32 output: lanes 0..3 hold per-tile sums of
        #              [fused CE, teacher CE, area CE, KL (pre T^2)]
        area_refs = refs[:num_areas]
        res_ref = refs[num_areas]

        blk_b, num_c = out_ref.shape

        labels = labels_ref[...]                                      # (B,1) i32
        valid = (labels >= 0).astype(jnp.float32)                     # (B,1)
        class_ids = jax.lax.broadcasted_iota(jnp.int32, (blk_b, num_c), 1)
        pick_mask = class_ids == labels                               # (B,C) bool

        def ce_rows(x):
            # per-row cross entropy contribution: lse(x) - x[label]
            m = jnp.max(x, axis=-1, keepdims=True)
            s = jnp.sum(jnp.exp(x - m), axis=-1, keepdims=True)
            lse = m + jnp.log(s)
            pick = jnp.sum(jnp.where(pick_mask, x, 0.0), axis=-1, keepdims=True)
            return lse - pick                                         # (B,1)

        out = out_ref[...].astype(jnp.float32)
        teacher = teacher_ref[...].astype(jnp.float32)

        fused_sum = jnp.sum(ce_rows(out) * valid)
        global_sum = jnp.sum(ce_rows(teacher) * valid)

        # Teacher soft targets at temperature T; reuse the LSE exponentials.
        t_scaled = teacher * inv_temp
        mt = jnp.max(t_scaled, axis=-1, keepdims=True)
        et = jnp.exp(t_scaled - mt)
        st = jnp.sum(et, axis=-1, keepdims=True)
        inv_st = 1.0 / st                                             # (B,1) only
        t_p = et * inv_st                                             # softmax(teacher/T)
        t_log_z = mt + jnp.log(st)                                    # lse(teacher/T)
        # sum_c t_p * log_softmax(teacher/T) = sum_c t_p * t_scaled - lse
        tp_tlogp = jnp.sum(t_p * t_scaled, axis=-1, keepdims=True) - t_log_z

        area_sum = jnp.float32(0.0)
        kl_sum = jnp.float32(0.0)
        for a_ref in area_refs:                                       # static unroll (A small)
            a = a_ref[...].astype(jnp.float32)
            area_sum = area_sum + jnp.sum(ce_rows(a) * valid)

            a_scaled = a * inv_temp
            ma = jnp.max(a_scaled, axis=-1, keepdims=True)
            sa = jnp.sum(jnp.exp(a_scaled - ma), axis=-1, keepdims=True)
            a_lse = ma + jnp.log(sa)                                  # lse(area/T)
            cross = jnp.sum(t_p * a_scaled, axis=-1, keepdims=True)
            kl_rows = tp_tlogp - cross + a_lse                        # (B,1)
            kl_sum = kl_sum + jnp.sum(kl_rows * valid)

        lane = jax.lax.broadcasted_iota(jnp.int32, (1, 1, 128), 2)
        res_ref[...] = (jnp.where(lane == 0, fused_sum, 0.0)
                        + jnp.where(lane == 1, global_sum, 0.0)
                        + jnp.where(lane == 2, area_sum, 0.0)
                        + jnp.where(lane == 3, kl_sum, 0.0))

    return kernel


def _pick_block_b(batch, num_classes, num_areas,
                  itemsize=4, budget_bytes=40 * 1024 * 1024):
    # Double-buffered input bytes per batch row must fit the VMEM budget
    # (v7x has only 64 MiB physical VMEM per TensorCore).
    per_row = 2 * (2 + num_areas) * num_classes * itemsize
    blk = budget_bytes // max(per_row, 1)
    blk = max(8, (blk // 8) * 8)
    blk = min(blk, 1024)
    blk = min(blk, ((batch + 7) // 8) * 8)
    return int(blk)


def dynamic_ensemble_loss(outputs, labels, *, block_b=None):
    """outputs: dict with 'out' (B,C), 'distill_teacher' (B,C),
    'area_logits' list/tuple of A arrays (B,C). labels: (B,) int."""
    out = outputs['out']
    teacher = outputs['distill_teacher']
    area_list = list(outputs['area_logits'])
    A = len(area_list)
    B, C = out.shape

    blk_b = block_b if block_b is not None else _pick_block_b(B, C, A)
    blk_b = max(8, (blk_b // 8) * 8)
    num_tiles = pl.cdiv(B, blk_b)
    B_pad = num_tiles * blk_b

    labels2d = labels.astype(jnp.int32).reshape(-1, 1)                # (B,1)
    if B_pad != B:
        pad = B_pad - B
        labels2d = jnp.pad(labels2d, ((0, pad), (0, 0)), constant_values=-1)
        out = jnp.pad(out, ((0, pad), (0, 0)))
        teacher = jnp.pad(teacher, ((0, pad), (0, 0)))
        area_list = [jnp.pad(a, ((0, pad), (0, 0))) for a in area_list]

    row_spec = pl.BlockSpec((blk_b, C), lambda i: (i, 0))
    in_specs = ([pl.BlockSpec((blk_b, 1), lambda i: (i, 0)), row_spec, row_spec]
                + [row_spec] * A)

    res = pl.pallas_call(
        _make_loss_kernel(A),
        out_shape=jax.ShapeDtypeStruct((num_tiles, 1, 128), jnp.float32),
        grid=(num_tiles,),
        in_specs=in_specs,
        out_specs=pl.BlockSpec((1, 1, 128), lambda i: (i, 0, 0)),
        compiler_params=pltpu.CompilerParams(
            dimension_semantics=("parallel",),
            vmem_limit_bytes=56 * 1024 * 1024),
    )(labels2d, out, teacher, *area_list)

    partial = jnp.sum(res.reshape(num_tiles, 128), axis=0)            # (128,)
    denom_b = float(B)
    denom_ab = float(A * B) if A > 0 else 1.0
    loss_fused = partial[0] / denom_b
    loss_global = partial[1] / denom_b
    loss_area = partial[2] / denom_ab
    loss_area_distill = partial[3] * (TEMP * TEMP) / denom_ab

    # Scalar mixing; alpha/beta are detached like the .item()-based PyTorch math.
    lf_det = jax.lax.stop_gradient(loss_fused)
    loss_factor = 1.0 - jnp.minimum(lf_det / MAX_LOSS_ESTIMATE, 1.0)
    alpha = MAX_ALPHA * loss_factor
    beta = MAX_BETA * loss_factor

    loss_total = (loss_fused
                  + alpha * loss_global
                  + beta * loss_area
                  + GAMMA * loss_area_distill)

    return {
        'loss': loss_total,
        'loss_fused': jax.lax.stop_gradient(loss_fused),
        'loss_global': jax.lax.stop_gradient(loss_global),
        'loss_area': jax.lax.stop_gradient(loss_area),
        'alpha': alpha,
        'beta': beta,
    }


if __name__ == "__main__":
    key = jax.random.PRNGKey(0)
    B, C, A = 12, 128, 3   # batch, classes, number of area heads

    k_out, k_teacher, k_area, k_lab = jax.random.split(key, 4)
    outputs = {
        'out': jax.random.normal(k_out, (B, C), dtype=jnp.float32),
        'distill_teacher': jax.random.normal(k_teacher, (B, C), dtype=jnp.float32),
        'area_logits': [
            jax.random.normal(jax.random.fold_in(k_area, i), (B, C), dtype=jnp.float32)
            for i in range(A)
        ],
    }
    labels = jax.random.randint(k_lab, (B,), 0, C, dtype=jnp.int32)

    # block_b=8 forces a 2-tile grid and 4 padded rows -> exercises tiling + masking.
    result = dynamic_ensemble_loss(outputs, labels, block_b=8)
    jax.block_until_ready(result)

    # Pure-JAX reference (same math, no kernel).
    def _ce(logits, lab):
        lse = jax.scipy.special.logsumexp(logits, axis=-1)
        picked = jnp.take_along_axis(logits, lab[:, None], axis=-1)[:, 0]
        return jnp.mean(lse - picked)

    ref_fused = _ce(outputs['out'], labels)
    ref_global = _ce(outputs['distill_teacher'], labels)
    ref_area = sum(_ce(a, labels) for a in outputs['area_logits']) / A
    tp = jax.nn.softmax(outputs['distill_teacher'] / TEMP, axis=-1)
    tlogp = jax.nn.log_softmax(outputs['distill_teacher'] / TEMP, axis=-1)
    ref_kl = sum(
        jnp.sum(tp * (tlogp - jax.nn.log_softmax(a / TEMP, axis=-1))) / B * TEMP ** 2
        for a in outputs['area_logits']) / A
    ref_factor = 1.0 - jnp.minimum(ref_fused / MAX_LOSS_ESTIMATE, 1.0)
    ref_total = (ref_fused + MAX_ALPHA * ref_factor * ref_global
                 + MAX_BETA * ref_factor * ref_area + GAMMA * ref_kl)

    assert jnp.allclose(result['loss_fused'], ref_fused, rtol=1e-4, atol=1e-4)
    assert jnp.allclose(result['loss_global'], ref_global, rtol=1e-4, atol=1e-4)
    assert jnp.allclose(result['loss_area'], ref_area, rtol=1e-4, atol=1e-4)
    assert jnp.allclose(result['loss'], ref_total, rtol=1e-4, atol=1e-4)

    print("KERNEL_OK")
</pallas_src>

<mosaic_0001>
module attributes {stable_mosaic.version = 11 : i64} {
  func.func @kernel(%arg0: i32, %arg1: memref<8x1xi32, #tpu.memory_space<vmem>>, %arg2: memref<8x128xf32, #tpu.memory_space<vmem>>, %arg3: memref<8x128xf32, #tpu.memory_space<vmem>>, %arg4: memref<8x128xf32, #tpu.memory_space<vmem>>, %arg5: memref<8x128xf32, #tpu.memory_space<vmem>>, %arg6: memref<8x128xf32, #tpu.memory_space<vmem>>, %arg7: memref<1x1x128xf32, #tpu.memory_space<vmem>>) attributes {dimension_semantics = [#tpu.dimension_semantics<parallel>], iteration_bounds = array<i64: 2>, scalar_prefetch = 0 : i64, scratch_operands = 0 : i64, tpu.core_type = #tpu.core_type<tc>, window_params = [{transform_indices = @transform_0, window_bounds = array<i64: 8, 1>}, {transform_indices = @transform_1, window_bounds = array<i64: 8, 128>}, {transform_indices = @transform_2, window_bounds = array<i64: 8, 128>}, {transform_indices = @transform_3, window_bounds = array<i64: 8, 128>}, {transform_indices = @transform_4, window_bounds = array<i64: 8, 128>}, {transform_indices = @transform_5, window_bounds = array<i64: 8, 128>}, {transform_indices = @transform_6, window_bounds = array<i64: 1, 1, 128>}]} {
    %c0 = arith.constant 0 : index
    %c0_0 = arith.constant 0 : index
    %0 = vector.load %arg1[%c0, %c0_0] : memref<8x1xi32, #tpu.memory_space<vmem>>, vector<8x1xi32>
    %c0_i32 = arith.constant 0 : i32
    %1 = vector.broadcast %c0_i32 : i32 to vector<8x1xi32>
    %2 = arith.cmpi sge, %0, %1 : vector<8x1xi32>
    %3 = arith.extui %2 : vector<8x1xi1> to vector<8x1xi32>
    %4 = arith.sitofp %3 : vector<8x1xi32> to vector<8x1xf32>
    %5 = tpu.iota {dimensions = array<i32: 1>} : vector<8x128xi32>
    %6 = vector.broadcast %0 : vector<8x1xi32> to vector<8x128xi32>
    %7 = arith.cmpi eq, %5, %6 : vector<8x128xi32>
    %c0_1 = arith.constant 0 : index
    %c0_2 = arith.constant 0 : index
    %8 = vector.load %arg2[%c0_1, %c0_2] : memref<8x128xf32, #tpu.memory_space<vmem>>, vector<8x128xf32>
    %c0_3 = arith.constant 0 : index
    %c0_4 = arith.constant 0 : index
    %9 = vector.load %arg3[%c0_3, %c0_4] : memref<8x128xf32, #tpu.memory_space<vmem>>, vector<8x128xf32>
    %cst = arith.constant dense<0xFF800000> : vector<8xf32>
    %10 = vector.multi_reduction <maximumf>, %8, %cst [1] : vector<8x128xf32> to vector<8xf32>
    %11 = vector.shape_cast %10 : vector<8xf32> to vector<8x1xf32>
    %12 = vector.broadcast %11 : vector<8x1xf32> to vector<8x128xf32>
    %13 = arith.subf %8, %12 : vector<8x128xf32>
    %14 = math.exp %13 : vector<8x128xf32>
    %cst_5 = arith.constant dense<0.000000e+00> : vector<8xf32>
    %15 = vector.multi_reduction <add>, %14, %cst_5 [1] : vector<8x128xf32> to vector<8xf32>
    %16 = vector.shape_cast %15 : vector<8xf32> to vector<8x1xf32>
    %17 = math.log %16 : vector<8x1xf32>
    %18 = arith.addf %11, %17 : vector<8x1xf32>
    %cst_6 = arith.constant 0.000000e+00 : f32
    %19 = vector.broadcast %cst_6 : f32 to vector<8x128xf32>
    %20 = arith.select %7, %8, %19 : vector<8x128xi1>, vector<8x128xf32>
    %cst_7 = arith.constant dense<0.000000e+00> : vector<8xf32>
    %21 = vector.multi_reduction <add>, %20, %cst_7 [1] : vector<8x128xf32> to vector<8xf32>
    %22 = vector.shape_cast %21 : vector<8xf32> to vector<8x1xf32>
    %23 = arith.subf %18, %22 : vector<8x1xf32>
    %24 = arith.mulf %23, %4 : vector<8x1xf32>
    %25 = vector.shape_cast %24 : vector<8x1xf32> to vector<1x8x1xf32>
    %cst_8 = arith.constant dense<0.000000e+00> : vector<1xf32>
    %26 = vector.multi_reduction <add>, %25, %cst_8 [1, 2] : vector<1x8x1xf32> to vector<1xf32>
    %27 = vector.shape_cast %26 : vector<1xf32> to vector<1x1x1xf32>
    %28 = vector.extract %27[0, 0, 0] : f32 from vector<1x1x1xf32>
    %cst_9 = arith.constant dense<0xFF800000> : vector<8xf32>
    %29 = vector.multi_reduction <maximumf>, %9, %cst_9 [1] : vector<8x128xf32> to vector<8xf32>
    %30 = vector.shape_cast %29 : vector<8xf32> to vector<8x1xf32>
    %31 = vector.broadcast %30 : vector<8x1xf32> to vector<8x128xf32>
    %32 = arith.subf %9, %31 : vector<8x128xf32>
    %33 = math.exp %32 : vector<8x128xf32>
    %cst_10 = arith.constant dense<0.000000e+00> : vector<8xf32>
    %34 = vector.multi_reduction <add>, %33, %cst_10 [1] : vector<8x128xf32> to vector<8xf32>
    %35 = vector.shape_cast %34 : vector<8xf32> to vector<8x1xf32>
    %36 = math.log %35 : vector<8x1xf32>
    %37 = arith.addf %30, %36 : vector<8x1xf32>
    %cst_11 = arith.constant 0.000000e+00 : f32
    %38 = vector.broadcast %cst_11 : f32 to vector<8x128xf32>
    %39 = arith.select %7, %9, %38 : vector<8x128xi1>, vector<8x128xf32>
    %cst_12 = arith.constant dense<0.000000e+00> : vector<8xf32>
    %40 = vector.multi_reduction <add>, %39, %cst_12 [1] : vector<8x128xf32> to vector<8xf32>
    %41 = vector.shape_cast %40 : vector<8xf32> to vector<8x1xf32>
    %42 = arith.subf %37, %41 : vector<8x1xf32>
    %43 = arith.mulf %42, %4 : vector<8x1xf32>
    %44 = vector.shape_cast %43 : vector<8x1xf32> to vector<1x8x1xf32>
    %cst_13 = arith.constant dense<0.000000e+00> : vector<1xf32>
    %45 = vector.multi_reduction <add>, %44, %cst_13 [1, 2] : vector<1x8x1xf32> to vector<1xf32>
    %46 = vector.shape_cast %45 : vector<1xf32> to vector<1x1x1xf32>
    %47 = vector.extract %46[0, 0, 0] : f32 from vector<1x1x1xf32>
    %cst_14 = arith.constant 2.500000e-01 : f32
    %48 = vector.broadcast %cst_14 : f32 to vector<8x128xf32>
    %49 = arith.mulf %9, %48 : vector<8x128xf32>
    %cst_15 = arith.constant dense<0xFF800000> : vector<8xf32>
    %50 = vector.multi_reduction <maximumf>, %49, %cst_15 [1] : vector<8x128xf32> to vector<8xf32>
    %51 = vector.shape_cast %50 : vector<8xf32> to vector<8x1xf32>
    %52 = vector.broadcast %51 : vector<8x1xf32> to vector<8x128xf32>
    %53 = arith.subf %49, %52 : vector<8x128xf32>
    %54 = math.exp %53 : vector<8x128xf32>
    %cst_16 = arith.constant dense<0.000000e+00> : vector<8xf32>
    %55 = vector.multi_reduction <add>, %54, %cst_16 [1] : vector<8x128xf32> to vector<8xf32>
    %56 = vector.shape_cast %55 : vector<8xf32> to vector<8x1xf32>
    %cst_17 = arith.constant 1.000000e+00 : f32
    %57 = vector.broadcast %cst_17 : f32 to vector<8x1xf32>
    %58 = arith.divf %57, %56 : vector<8x1xf32>
    %59 = vector.broadcast %58 : vector<8x1xf32> to vector<8x128xf32>
    %60 = arith.mulf %54, %59 : vector<8x128xf32>
    %61 = math.log %56 : vector<8x1xf32>
    %62 = arith.addf %51, %61 : vector<8x1xf32>
    %63 = arith.mulf %60, %49 : vector<8x128xf32>
    %cst_18 = arith.constant dense<0.000000e+00> : vector<8xf32>
    %64 = vector.multi_reduction <add>, %63, %cst_18 [1] : vector<8x128xf32> to vector<8xf32>
    %65 = vector.shape_cast %64 : vector<8xf32> to vector<8x1xf32>
    %66 = arith.subf %65, %62 : vector<8x1xf32>
    %c0_19 = arith.constant 0 : index
    %c0_20 = arith.constant 0 : index
    %67 = vector.load %arg4[%c0_19, %c0_20] : memref<8x128xf32, #tpu.memory_space<vmem>>, vector<8x128xf32>
    %cst_21 = arith.constant dense<0xFF800000> : vector<8xf32>
    %68 = vector.multi_reduction <maximumf>, %67, %cst_21 [1] : vector<8x128xf32> to vector<8xf32>
    %69 = vector.shape_cast %68 : vector<8xf32> to vector<8x1xf32>
    %70 = vector.broadcast %69 : vector<8x1xf32> to vector<8x128xf32>
    %71 = arith.subf %67, %70 : vector<8x128xf32>
    %72 = math.exp %71 : vector<8x128xf32>
    %cst_22 = arith.constant dense<0.000000e+00> : vector<8xf32>
    %73 = vector.multi_reduction <add>, %72, %cst_22 [1] : vector<8x128xf32> to vector<8xf32>
    %74 = vector.shape_cast %73 : vector<8xf32> to vector<8x1xf32>
    %75 = math.log %74 : vector<8x1xf32>
    %76 = arith.addf %69, %75 : vector<8x1xf32>
    %cst_23 = arith.constant 0.000000e+00 : f32
    %77 = vector.broadcast %cst_23 : f32 to vector<8x128xf32>
    %78 = arith.select %7, %67, %77 : vector<8x128xi1>, vector<8x128xf32>
    %cst_24 = arith.constant dense<0.000000e+00> : vector<8xf32>
    %79 = vector.multi_reduction <add>, %78, %cst_24 [1] : vector<8x128xf32> to vector<8xf32>
    %80 = vector.shape_cast %79 : vector<8xf32> to vector<8x1xf32>
    %81 = arith.subf %76, %80 : vector<8x1xf32>
    %82 = arith.mulf %81, %4 : vector<8x1xf32>
    %83 = vector.shape_cast %82 : vector<8x1xf32> to vector<1x8x1xf32>
    %cst_25 = arith.constant dense<0.000000e+00> : vector<1xf32>
    %84 = vector.multi_reduction <add>, %83, %cst_25 [1, 2] : vector<1x8x1xf32> to vector<1xf32>
    %85 = vector.shape_cast %84 : vector<1xf32> to vector<1x1x1xf32>
    %86 = vector.extract %85[0, 0, 0] : f32 from vector<1x1x1xf32>
    %cst_26 = arith.constant 0.000000e+00 : f32
    %87 = arith.addf %cst_26, %86 : f32
    %cst_27 = arith.constant 2.500000e-01 : f32
    %88 = vector.broadcast %cst_27 : f32 to vector<8x128xf32>
    %89 = arith.mulf %67, %88 : vector<8x128xf32>
    %cst_28 = arith.constant dense<0xFF800000> : vector<8xf32>
    %90 = vector.multi_reduction <maximumf>, %89, %cst_28 [1] : vector<8x128xf32> to vector<8xf32>
    %91 = vector.shape_cast %90 : vector<8xf32> to vector<8x1xf32>
    %92 = vector.broadcast %91 : vector<8x1xf32> to vector<8x128xf32>
    %93 = arith.subf %89, %92 : vector<8x128xf32>
    %94 = math.exp %93 : vector<8x128xf32>
    %cst_29 = arith.constant dense<0.000000e+00> : vector<8xf32>
    %95 = vector.multi_reduction <add>, %94, %cst_29 [1] : vector<8x128xf32> to vector<8xf32>
    %96 = vector.shape_cast %95 : vector<8xf32> to vector<8x1xf32>
    %97 = math.log %96 : vector<8x1xf32>
    %98 = arith.addf %91, %97 : vector<8x1xf32>
    %99 = arith.mulf %60, %89 : vector<8x128xf32>
    %cst_30 = arith.constant dense<0.000000e+00> : vector<8xf32>
    %100 = vector.multi_reduction <add>, %99, %cst_30 [1] : vector<8x128xf32> to vector<8xf32>
    %101 = vector.shape_cast %100 : vector<8xf32> to vector<8x1xf32>
    %102 = arith.subf %66, %101 : vector<8x1xf32>
    %103 = arith.addf %102, %98 : vector<8x1xf32>
    %104 = arith.mulf %103, %4 : vector<8x1xf32>
    %105 = vector.shape_cast %104 : vector<8x1xf32> to vector<1x8x1xf32>
    %cst_31 = arith.constant dense<0.000000e+00> : vector<1xf32>
    %106 = vector.multi_reduction <add>, %105, %cst_31 [1, 2] : vector<1x8x1xf32> to vector<1xf32>
    %107 = vector.shape_cast %106 : vector<1xf32> to vector<1x1x1xf32>
    %108 = vector.extract %107[0, 0, 0] : f32 from vector<1x1x1xf32>
    %cst_32 = arith.constant 0.000000e+00 : f32
    %109 = arith.addf %cst_32, %108 : f32
    %c0_33 = arith.constant 0 : index
    %c0_34 = arith.constant 0 : index
    %110 = vector.load %arg5[%c0_33, %c0_34] : memref<8x128xf32, #tpu.memory_space<vmem>>, vector<8x128xf32>
    %cst_35 = arith.constant dense<0xFF800000> : vector<8xf32>
    %111 = vector.multi_reduction <maximumf>, %110, %cst_35 [1] : vector<8x128xf32> to vector<8xf32>
    %112 = vector.shape_cast %111 : vector<8xf32> to vector<8x1xf32>
    %113 = vector.broadcast %112 : vector<8x1xf32> to vector<8x128xf32>
    %114 = arith.subf %110, %113 : vector<8x128xf32>
    %115 = math.exp %114 : vector<8x128xf32>
    %cst_36 = arith.constant dense<0.000000e+00> : vector<8xf32>
    %116 = vector.multi_reduction <add>, %115, %cst_36 [1] : vector<8x128xf32> to vector<8xf32>
    %117 = vector.shape_cast %116 : vector<8xf32> to vector<8x1xf32>
    %118 = math.log %117 : vector<8x1xf32>
    %119 = arith.addf %112, %118 : vector<8x1xf32>
    %cst_37 = arith.constant 0.000000e+00 : f32
    %120 = vector.broadcast %cst_37 : f32 to vector<8x128xf32>
    %121 = arith.select %7, %110, %120 : vector<8x128xi1>, vector<8x128xf32>
    %cst_38 = arith.constant dense<0.000000e+00> : vector<8xf32>
    %122 = vector.multi_reduction <add>, %121, %cst_38 [1] : vector<8x128xf32> to vector<8xf32>
    %123 = vector.shape_cast %122 : vector<8xf32> to vector<8x1xf32>
    %124 = arith.subf %119, %123 : vector<8x1xf32>
    %125 = arith.mulf %124, %4 : vector<8x1xf32>
    %126 = vector.shape_cast %125 : vector<8x1xf32> to vector<1x8x1xf32>
    %cst_39 = arith.constant dense<0.000000e+00> : vector<1xf32>
    %127 = vector.multi_reduction <add>, %126, %cst_39 [1, 2] : vector<1x8x1xf32> to vector<1xf32>
    %128 = vector.shape_cast %127 : vector<1xf32> to vector<1x1x1xf32>
    %129 = vector.extract %128[0, 0, 0] : f32 from vector<1x1x1xf32>
    %130 = arith.addf %87, %129 : f32
    %cst_40 = arith.constant 2.500000e-01 : f32
    %131 = vector.broadcast %cst_40 : f32 to vector<8x128xf32>
    %132 = arith.mulf %110, %131 : vector<8x128xf32>
    %cst_41 = arith.constant dense<0xFF800000> : vector<8xf32>
    %133 = vector.multi_reduction <maximumf>, %132, %cst_41 [1] : vector<8x128xf32> to vector<8xf32>
    %134 = vector.shape_cast %133 : vector<8xf32> to vector<8x1xf32>
    %135 = vector.broadcast %134 : vector<8x1xf32> to vector<8x128xf32>
    %136 = arith.subf %132, %135 : vector<8x128xf32>
    %137 = math.exp %136 : vector<8x128xf32>
    %cst_42 = arith.constant dense<0.000000e+00> : vector<8xf32>
    %138 = vector.multi_reduction <add>, %137, %cst_42 [1] : vector<8x128xf32> to vector<8xf32>
    %139 = vector.shape_cast %138 : vector<8xf32> to vector<8x1xf32>
    %140 = math.log %139 : vector<8x1xf32>
    %141 = arith.addf %134, %140 : vector<8x1xf32>
    %142 = arith.mulf %60, %132 : vector<8x128xf32>
    %cst_43 = arith.constant dense<0.000000e+00> : vector<8xf32>
    %143 = vector.multi_reduction <add>, %142, %cst_43 [1] : vector<8x128xf32> to vector<8xf32>
    %144 = vector.shape_cast %143 : vector<8xf32> to vector<8x1xf32>
    %145 = arith.subf %66, %144 : vector<8x1xf32>
    %146 = arith.addf %145, %141 : vector<8x1xf32>
    %147 = arith.mulf %146, %4 : vector<8x1xf32>
    %148 = vector.shape_cast %147 : vector<8x1xf32> to vector<1x8x1xf32>
    %cst_44 = arith.constant dense<0.000000e+00> : vector<1xf32>
    %149 = vector.multi_reduction <add>, %148, %cst_44 [1, 2] : vector<1x8x1xf32> to vector<1xf32>
    %150 = vector.shape_cast %149 : vector<1xf32> to vector<1x1x1xf32>
    %151 = vector.extract %150[0, 0, 0] : f32 from vector<1x1x1xf32>
    %152 = arith.addf %109, %151 : f32
    %c0_45 = arith.constant 0 : index
    %c0_46 = arith.constant 0 : index
    %153 = vector.load %arg6[%c0_45, %c0_46] : memref<8x128xf32, #tpu.memory_space<vmem>>, vector<8x128xf32>
    %cst_47 = arith.constant dense<0xFF800000> : vector<8xf32>
    %154 = vector.multi_reduction <maximumf>, %153, %cst_47 [1] : vector<8x128xf32> to vector<8xf32>
    %155 = vector.shape_cast %154 : vector<8xf32> to vector<8x1xf32>
    %156 = vector.broadcast %155 : vector<8x1xf32> to vector<8x128xf32>
    %157 = arith.subf %153, %156 : vector<8x128xf32>
    %158 = math.exp %157 : vector<8x128xf32>
    %cst_48 = arith.constant dense<0.000000e+00> : vector<8xf32>
    %159 = vector.multi_reduction <add>, %158, %cst_48 [1] : vector<8x128xf32> to vector<8xf32>
    %160 = vector.shape_cast %159 : vector<8xf32> to vector<8x1xf32>
    %161 = math.log %160 : vector<8x1xf32>
    %162 = arith.addf %155, %161 : vector<8x1xf32>
    %cst_49 = arith.constant 0.000000e+00 : f32
    %163 = vector.broadcast %cst_49 : f32 to vector<8x128xf32>
    %164 = arith.select %7, %153, %163 : vector<8x128xi1>, vector<8x128xf32>
    %cst_50 = arith.constant dense<0.000000e+00> : vector<8xf32>
    %165 = vector.multi_reduction <add>, %164, %cst_50 [1] : vector<8x128xf32> to vector<8xf32>
    %166 = vector.shape_cast %165 : vector<8xf32> to vector<8x1xf32>
    %167 = arith.subf %162, %166 : vector<8x1xf32>
    %168 = arith.mulf %167, %4 : vector<8x1xf32>
    %169 = vector.shape_cast %168 : vector<8x1xf32> to vector<1x8x1xf32>
    %cst_51 = arith.constant dense<0.000000e+00> : vector<1xf32>
    %170 = vector.multi_reduction <add>, %169, %cst_51 [1, 2] : vector<1x8x1xf32> to vector<1xf32>
    %171 = vector.shape_cast %170 : vector<1xf32> to vector<1x1x1xf32>
    %172 = vector.extract %171[0, 0, 0] : f32 from vector<1x1x1xf32>
    %173 = arith.addf %130, %172 : f32
    %cst_52 = arith.constant 2.500000e-01 : f32
    %174 = vector.broadcast %cst_52 : f32 to vector<8x128xf32>
    %175 = arith.mulf %153, %174 : vector<8x128xf32>
    %cst_53 = arith.constant dense<0xFF800000> : vector<8xf32>
    %176 = vector.multi_reduction <maximumf>, %175, %cst_53 [1] : vector<8x128xf32> to vector<8xf32>
    %177 = vector.shape_cast %176 : vector<8xf32> to vector<8x1xf32>
    %178 = vector.broadcast %177 : vector<8x1xf32> to vector<8x128xf32>
    %179 = arith.subf %175, %178 : vector<8x128xf32>
    %180 = math.exp %179 : vector<8x128xf32>
    %cst_54 = arith.constant dense<0.000000e+00> : vector<8xf32>
    %181 = vector.multi_reduction <add>, %180, %cst_54 [1] : vector<8x128xf32> to vector<8xf32>
    %182 = vector.shape_cast %181 : vector<8xf32> to vector<8x1xf32>
    %183 = math.log %182 : vector<8x1xf32>
    %184 = arith.addf %177, %183 : vector<8x1xf32>
    %185 = arith.mulf %60, %175 : vector<8x128xf32>
    %cst_55 = arith.constant dense<0.000000e+00> : vector<8xf32>
    %186 = vector.multi_reduction <add>, %185, %cst_55 [1] : vector<8x128xf32> to vector<8xf32>
    %187 = vector.shape_cast %186 : vector<8xf32> to vector<8x1xf32>
    %188 = arith.subf %66, %187 : vector<8x1xf32>
    %189 = arith.addf %188, %184 : vector<8x1xf32>
    %190 = arith.mulf %189, %4 : vector<8x1xf32>
    %191 = vector.shape_cast %190 : vector<8x1xf32> to vector<1x8x1xf32>
    %cst_56 = arith.constant dense<0.000000e+00> : vector<1xf32>
    %192 = vector.multi_reduction <add>, %191, %cst_56 [1, 2] : vector<1x8x1xf32> to vector<1xf32>
    %193 = vector.shape_cast %192 : vector<1xf32> to vector<1x1x1xf32>
    %194 = vector.extract %193[0, 0, 0] : f32 from vector<1x1x1xf32>
    %195 = arith.addf %152, %194 : f32
    %196 = tpu.iota {dimensions = array<i32: 2>} : vector<1x1x128xi32>
    %c0_i32_57 = arith.constant 0 : i32
    %197 = vector.broadcast %c0_i32_57 : i32 to vector<1x1x128xi32>
    %198 = arith.cmpi eq, %196, %197 : vector<1x1x128xi32>
    %cst_58 = arith.constant 0.000000e+00 : f32
    %199 = vector.broadcast %28 : f32 to vector<1x1x128xf32>
    %200 = vector.broadcast %cst_58 : f32 to vector<1x1x128xf32>
    %201 = arith.select %198, %199, %200 : vector<1x1x128xi1>, vector<1x1x128xf32>
    %c1_i32 = arith.constant 1 : i32
    %202 = vector.broadcast %c1_i32 : i32 to vector<1x1x128xi32>
    %203 = arith.cmpi eq, %196, %202 : vector<1x1x128xi32>
    %cst_59 = arith.constant 0.000000e+00 : f32
    %204 = vector.broadcast %47 : f32 to vector<1x1x128xf32>
    %205 = vector.broadcast %cst_59 : f32 to vector<1x1x128xf32>
    %206 = arith.select %203, %204, %205 : vector<1x1x128xi1>, vector<1x1x128xf32>
    %207 = arith.addf %201, %206 : vector<1x1x128xf32>
    %c2_i32 = arith.constant 2 : i32
    %208 = vector.broadcast %c2_i32 : i32 to vector<1x1x128xi32>
    %209 = arith.cmpi eq, %196, %208 : vector<1x1x128xi32>
    %cst_60 = arith.constant 0.000000e+00 : f32
    %210 = vector.broadcast %173 : f32 to vector<1x1x128xf32>
    %211 = vector.broadcast %cst_60 : f32 to vector<1x1x128xf32>
    %212 = arith.select %209, %210, %211 : vector<1x1x128xi1>, vector<1x1x128xf32>
    %213 = arith.addf %207, %212 : vector<1x1x128xf32>
    %c3_i32 = arith.constant 3 : i32
    %214 = vector.broadcast %c3_i32 : i32 to vector<1x1x128xi32>
    %215 = arith.cmpi eq, %196, %214 : vector<1x1x128xi32>
    %cst_61 = arith.constant 0.000000e+00 : f32
    %216 = vector.broadcast %195 : f32 to vector<1x1x128xf32>
    %217 = vector.broadcast %cst_61 : f32 to vector<1x1x128xf32>
    %218 = arith.select %215, %216, %217 : vector<1x1x128xi1>, vector<1x1x128xf32>
    %219 = arith.addf %213, %218 : vector<1x1x128xf32>
    %c0_62 = arith.constant 0 : index
    %c0_63 = arith.constant 0 : index
    %c0_64 = arith.constant 0 : index
    %220 = vector.load %arg7[%c0_62, %c0_63, %c0_64] : memref<1x1x128xf32, #tpu.memory_space<vmem>>, vector<1x1x128xf32>
    tpu.vector_store %arg7[%c0_62, %c0_63, %c0_64], %219 {strides = array<i32>} : memref<1x1x128xf32, #tpu.memory_space<vmem>>, vector<1x1x128xf32>,
    return
  }
  func.func @transform_0(%arg0: i32) -> (i32, i32) {
    %c0_i32 = arith.constant 0 : i32
    %c0_i32_0 = arith.constant 0 : i32
    return %arg0, %c0_i32 : i32, i32
  }
  func.func @transform_1(%arg0: i32) -> (i32, i32) {
    %c0_i32 = arith.constant 0 : i32
    %c0_i32_0 = arith.constant 0 : i32
    return %arg0, %c0_i32 : i32, i32
  }
  func.func @transform_2(%arg0: i32) -> (i32, i32) {
    %c0_i32 = arith.constant 0 : i32
    %c0_i32_0 = arith.constant 0 : i32
    return %arg0, %c0_i32 : i32, i32
  }
  func.func @transform_3(%arg0: i32) -> (i32, i32) {
    %c0_i32 = arith.constant 0 : i32
    %c0_i32_0 = arith.constant 0 : i32
    return %arg0, %c0_i32 : i32, i32
  }
  func.func @transform_4(%arg0: i32) -> (i32, i32) {
    %c0_i32 = arith.constant 0 : i32
    %c0_i32_0 = arith.constant 0 : i32
    return %arg0, %c0_i32 : i32, i32
  }
  func.func @transform_5(%arg0: i32) -> (i32, i32) {
    %c0_i32 = arith.constant 0 : i32
    %c0_i32_0 = arith.constant 0 : i32
    return %arg0, %c0_i32 : i32, i32
  }
  func.func @transform_6(%arg0: i32) -> (i32, i32, i32) {
    %c0_i32 = arith.constant 0 : i32
    %c0_i32_0 = arith.constant 0 : i32
    %c0_i32_1 = arith.constant 0 : i32
    return %arg0, %c0_i32, %c0_i32_0 : i32, i32, i32
  }
}

</mosaic_0001>

<bundles_post_ra>
// kernel: tpu_custom_call.1
= control target key start
LH: loop header
LB: loop body
LE: loop exit
PB: predicated region body
PF: predicated region fallthrough
CT: control target
= control target key end

     0   :  { %s1590_s0 = inlined_call_operand.vmem [shape: s32[16,1], index: 0, kind: input, shape index: {}]   ;;  %s1591_s1 = inlined_call_operand.vmem [shape: f32[16,128], index: 1, kind: input, shape index: {}]   ;;  %s1592_s2 = inlined_call_operand.hbm [shape: f32[16,128], index: 2, kind: input, shape index: {}]   ;;  %s1593_s3 = inlined_call_operand.hbm [shape: f32[16,128], index: 3, kind: input, shape index: {}]   ;;  %s1594_s4 = inlined_call_operand.hbm [shape: f32[16,128], index: 4, kind: input, shape index: {}]   ;;  %s1595_s5 = inlined_call_operand.hbm [shape: f32[16,128], index: 5, kind: input, shape index: {}]   ;;  %s1596_s6 = inlined_call_operand.hbm [shape: f32[2,1,128], index: 6, kind: output, shape index: {}]  }
   0x1   :  { %1602 = sst [smem:[#allocation20_spill]] %s1593_s3 }
   0x2   :  { %11 = vsyncpa [#allocation3], 0 }
   0x3   :  { %13 = vsyncpa [#allocation3 + $0x1], 0 }
   0x4   :  { %14 = vsyncpa [#allocation6], 0 }
   0x5   :  { %16 = vsyncpa [#allocation6 + $0x1], 0 }
   0x6   :  { %17 = vsyncpa [#allocation9], 0 }
   0x7   :  { %19 = vsyncpa [#allocation9 + $0x1], 0 }
   0x8   :  { %20 = vsyncpa [#allocation4], 0 }
   0x9   :  { %22 = vsyncpa [#allocation4 + $0x1], 0  ;;  %s1233_s21 = smov 0   ;;  %s1235_s22 = smov 0  }
   0xa   :  { %s1237_s23 = smov 0   ;;  %s1239_s24 = smov 0  }
   0xb LB: > { %1603 = sst [smem:[#allocation15_spill]] %s1190_s23  ;;  %s1254_s25 = sadd.s32 4294967295, %s1194_s24   ;;  %s1194_s24 = sphi %s1239_s24, %s1618_s24   ;;  %s1190_s23 = sphi %s1237_s23, %s1620_s23   ;;  %s1186_s22 = sphi %s1235_s22, %s1622_s22   ;;  %s1182_s21 = sphi %s1233_s21, %s1621_s21  }
   0xc   : > { %1604 = sst [smem:[#allocation16_spill]] %s1194_s24  ;;  %s860_s26 = sadd.s32 4294967294, %s1194_s24  }
   0xd   : > { %s1258_s27 = sadd.s32 1, %s1194_s24   ;;  %s87_s28 = sadd.s32 1, %s1190_s23 }
   0xe   : > { %1605 = sst [smem:[#allocation17_spill]] %s1258_s27  ;;  %s84_s29 = ssub.s32 %s1194_s24, %s1258_s27 }
   0xf   : > { %p94_p0 = scmp.ne.s32.totalorder %s1190_s23, %s1186_s22  ;;  %p85_p1 = scmp.eq.s32.totalorder %s84_s29, 0 }
  0x10   : > { %p95_p2 = scmp.eq.s32.totalorder %s1194_s24, 0  ;;  %p100_p3 = scmp.ne.s32.totalorder %s1186_s22, %s1182_s21 }
  0x11   : > { %p101_p4 = scmp.eq.s32.totalorder %s1254_s25, 0  ;;  %p202_p7 = scmp.eq.s32.totalorder %s1254_s25, 1 }
  0x12   : > { %s1270_s30 = scalar_select %p85_p1, %s1190_s23, %s87_s28  }
  0x13   : > { %p96_p5 = por %p95_p2, %p94_p0  ;;  %p1272_p6 = por %p101_p4, %p100_p3 }
  0x14   : > { %1606 = sst [smem:[#allocation18_spill]] %s1270_s30  ;;  %p208_p8 = scmp.eq.s32.totalorder %s860_s26, 1 }
  0x15   : > { %p862_p9 = scmp.ge.s32.totalorder %s1194_s24, 2  ;;  %p924_p10 = scmp.lt.s32.totalorder %s1194_s24, 2 }
  0x16   : > { %p1279_p11 = por %p202_p7, %p94_p0  ;;  %p1283_p12 = por %p208_p8, %p100_p3 }
  0x17   : > { %s1288_s10 = sand.u32 1, %s1190_s23   ;;  %s1291_s11 = sshll.u32 %s1194_s24, 3 }
  0x18   : > { %s1609_s9 = scalar_select %p1283_p12, 1, 0 }
  0x19   : > { %s1294_s12 = sshll.u32 %s1288_s10, 3  ;;  %p1296_p13 = pnand %p924_p10, %p96_p5 }
  0x1a   : > { %1610 = sst [smem:[#allocation19_spill]] %s1609_s9  ;;  %s261_s14 = sand.u32 1, %s1194_s24  }
  0x1b   : > { %s1612_s3 = sld [smem:[#allocation20_spill]]  ;;  %s265_s18 = scalar_lea.vmem [#allocation5], %s1294_s12 }
  0x1c   : > { %s273_s19 = sshll.u32 %s265_s18, 4  ;;  %p871_p0 = scmp.ge.s32.totalorder %s1194_s24, 1  ;;  %s274_s19 = int_to_ptr.vmem [resolvable:$true] %s273_s19 }
  0x1d   : > { %s1307_s26 = scalar_lea.sflag [#allocation6], %s261_s14  ;;  %p1004_p2 = pneg %p1296_p13 }
  0x21   : > { %s269_s17 = scalar_lea.hbm %s1612_s3, %s1291_s11  ;;  %s1007_s18 = scalar_lea.hbm %s1612_s3, 16 }
  0x22   : > { %s271_s20 = sshll.u32 %s269_s17, 4  ;;  %s272_s20 = int_to_ptr.hbm [resolvable:$true] %s271_s20 }
  0x23   : > { %s1000_s28 = sshra.s32 %s272_s20, 4  ;;  %s1001_s28 = int_to_ptr.hbm [resolvable:$true] %s1000_s28 }
  0x24   : > { %s1002_s29 = scalar_lea.hbm %s1001_s28, 8  ;;  %p1008_p5 = scmp.lt.s32.totalorder %s1001_s28, %s1612_s3 }
  0x25   : > { %p1003_p1 = scmp.ne.s32.totalorder %s1001_s28, %s1002_s29  ;;  %p1009_p7 = scmp.lt.s32.totalorder %s1007_s18, %s1002_s29 }
  0x27   : > { %p1005_p3 = pnand %p1004_p2, %p1003_p1  ;;  %p1010_p8 = por %p1009_p7, %p1008_p5 }
  0x29   : > { %p1006_p4 = pneg %p1005_p3 }
  0x2b   : > { %p1011_p10 = pnand %p1010_p8, %p1006_p4 }
  0x2d   : > { %1014 = shalt.err (!%p1011_p10)
}
  0x2e   : > { %913 = dma.hbm_to_vmem [thread:$0]  (!%p1296_p13), %s272_s20, 128, %s274_s19, %s1307_s26  }
  0x2f   : > { %p316_p1 = scmp.lt.s32.totalorder %s1194_s24, 3  ;;  %s250_s30 = scalar_lea.hbm %s1592_s2, %s1291_s11 }
  0x30   : > { %s252_s29 = sshll.u32 %s250_s30, 4  ;;  %s246_s16 = scalar_lea.vmem [#allocation2], %s1294_s12  ;;  %s253_s29 = int_to_ptr.hbm [resolvable:$true] %s252_s29 }
  0x31   : > { %p1330_p3 = pnand %p871_p0, %p316_p1  ;;  %s254_s18 = sshll.u32 %s246_s16, 4  ;;  %s255_s18 = int_to_ptr.vmem [resolvable:$true] %s254_s18 }
  0x32   : > { %s243_s17 = scalar_lea.sflag [#allocation3], %s1288_s10  ;;  %s1030_s3 = sshra.s32 %s253_s29, 4  ;;  %s1031_s3 = int_to_ptr.hbm [resolvable:$true] %s1030_s3 }
  0x33   : > { %s1032_s23 = scalar_lea.hbm %s1031_s3, 8  ;;  %s1037_s14 = scalar_lea.hbm %s1592_s2, 16 }
  0x34   : > { %p1033_p4 = scmp.ne.s32.totalorder %s1031_s3, %s1032_s23  ;;  %p1038_p0 = scmp.lt.s32.totalorder %s1031_s3, %s1592_s2 }
  0x35   : > { %p1039_p8 = scmp.lt.s32.totalorder %s1037_s14, %s1032_s23 }
  0x36   : > { %p1035_p5 = pnand %p1033_p4, %p1004_p2 }
  0x37   : > { %p1040_p10 = por %p1039_p8, %p1038_p0 }
  0x38   : > { %p1036_p7 = pneg %p1035_p5 }
  0x3a   : > { %p1041_p1 = pnand %p1040_p10, %p1036_p7 }
  0x3c   : > { %1044 = shalt.err (!%p1041_p1)
}
  0x3d   : > { %910 = dma.hbm_to_vmem [thread:$0]  (!%p1296_p13), %s253_s29, 128, %s255_s18, %s243_s17  }
  0x3e   : > { %s288_s24 = scalar_lea.hbm %s1594_s4, %s1291_s11  ;;  %s284_s19 = scalar_lea.vmem [#allocation7], %s1294_s12 }
  0x3f   : > { %s292_s20 = sshll.u32 %s284_s19, 4  ;;  %s290_s9 = sshll.u32 %s288_s24, 4  ;;  %s293_s20 = int_to_ptr.vmem [resolvable:$true] %s292_s20  ;;  %s291_s9 = int_to_ptr.hbm [resolvable:$true] %s290_s9 }
  0x40   : > { %s1060_s3 = sshra.s32 %s291_s9, 4  ;;  %s1067_s29 = scalar_lea.hbm %s1594_s4, 16  ;;  %s1061_s3 = int_to_ptr.hbm [resolvable:$true] %s1060_s3 }
  0x41   : > { %s1062_s23 = scalar_lea.hbm %s1061_s3, 8  ;;  %p1068_p0 = scmp.lt.s32.totalorder %s1061_s3, %s1594_s4 }
  0x42   : > { %p1063_p4 = scmp.ne.s32.totalorder %s1061_s3, %s1062_s23  ;;  %p1069_p8 = scmp.lt.s32.totalorder %s1067_s29, %s1062_s23 }
  0x44   : > { %p1065_p5 = pnand %p1063_p4, %p1004_p2  ;;  %p1070_p10 = por %p1069_p8, %p1068_p0 }
  0x46   : > { %p1066_p7 = pneg %p1065_p5 }
  0x48   : > { %p1071_p1 = pnand %p1070_p10, %p1066_p7 }
  0x4a   : > { %1074 = shalt.err (!%p1071_p1)
}
  0x4b   : > { %916 = dma.hbm_to_vmem [thread:$0]  (!%p1296_p13), %s291_s9, 128, %s293_s20, %s1307_s26  }
  0x4c   : > { %s307_s30 = scalar_lea.hbm %s1595_s5, %s1291_s11  ;;  %s303_s19 = scalar_lea.vmem [#allocation8], %s1294_s12 }
  0x4d   : > { %s309_s16 = sshll.u32 %s307_s30, 4  ;;  %s311_s27 = sshll.u32 %s303_s19, 4  ;;  %s310_s16 = int_to_ptr.hbm [resolvable:$true] %s309_s16  ;;  %s312_s27 = int_to_ptr.vmem [resolvable:$true] %s311_s27 }
  0x4e   : > { %s300_s3 = scalar_lea.sflag [#allocation9], %s1288_s10  ;;  %s1090_s23 = sshra.s32 %s310_s16, 4  ;;  %s1091_s23 = int_to_ptr.hbm [resolvable:$true] %s1090_s23 }
  0x4f   : > { %s1092_s14 = scalar_lea.hbm %s1091_s23, 8  ;;  %s1097_s26 = scalar_lea.hbm %s1595_s5, 16 }
  0x50   : > { %p1093_p4 = scmp.ne.s32.totalorder %s1091_s23, %s1092_s14  ;;  %p1098_p0 = scmp.lt.s32.totalorder %s1091_s23, %s1595_s5 }
  0x51   : > { %p1099_p8 = scmp.lt.s32.totalorder %s1097_s26, %s1092_s14 }
  0x52   : > { %p1095_p5 = pnand %p1093_p4, %p1004_p2 }
  0x53   : > { %p1100_p10 = por %p1099_p8, %p1098_p0 }
  0x54   : > { %p1096_p7 = pneg %p1095_p5 }
  0x56   : > { %p1101_p1 = pnand %p1100_p10, %p1096_p7 }
  0x58   : > { %1104 = shalt.err (!%p1101_p1)
}
  0x59   : > { %919 = dma.hbm_to_vmem [thread:$0]  (!%p1296_p13), %s310_s16, 128, %s312_s27, %s300_s3  }
  0x5a   : > { %320 = sbr.rel (%p1330_p3) target bundleno = 700 (0x2bc), region = 44  ;;  %s1384_s10 = sand.u32 (!%p1330_p3), 1, %s1186_s22  }
  0x5b   : > { %s1387_s12 = sshll.u32 (!%p1330_p3), %s1384_s10, 3  ;;  %s323_s18 = scalar_lea.sflag (!%p1330_p3), [#allocation3], %s1384_s10 }
  0x5c   : > { %s326_s17 = scalar_lea.vmem (!%p1330_p3), [#allocation2], %s1387_s12 }
  0x5f   : > { %1165 = dma.done.wait (%p1272_p6), %s323_s18, 128  }
  0x60   : > { %1167 = vsyncadd (%p1272_p6), %s323_s18, 4294967168  ;;  %s332_s13 = sand.u32 1, %s1254_s25   ;;  %s336_s24 = scalar_lea.vmem [#allocation5], %s1387_s12 }
  0x61   : > { %s333_s28 = scalar_lea.sflag [#allocation6], %s332_s13 }
  0x62   : > { %1169 = dma.done.wait (%p1272_p6), %s333_s28, 256  }
  0x63   : > { %1171 = vsyncadd (%p1272_p6), %s333_s28, 4294967040  ;;  %s346_s15 = scalar_lea.vmem [#allocation7], %s1387_s12  ;;  %s353_s30 = scalar_lea.sflag [#allocation9], %s1384_s10 }
  0x64   : > { %s356_s16 = scalar_lea.vmem [#allocation8], %s1387_s12 }
  0x65   : > { %1173 = dma.done.wait (%p1272_p6), %s353_s30, 128  }
  0x66   : > { %1175 = vsyncadd (%p1272_p6), %s353_s30, 4294967168  ;;  %p408_p13 = scmp.lt.s32.totalorder %s1254_s25, 1  ;;  %v1196_v0 = vmov 0   ;;  %v1415_v2 = vld [vmem:[%s326_s17] sm:$0xff]  ;;  %v1417_v3 = vld [vmem:[%s336_s24] sm:$0xff]  ;;  %v420_v41 = vlaneseq  ;;  %vm443_vm6 = vcmask 7168  }
  0x67   : > { %960 = vset.pattern.permute.xlu1 %v1196_v0  ;;  %961 = vset.pattern.permute.xlu0 %v1196_v0  ;;  %v1421_v4 = vmul.f32 0.25, %v1415_v2  ;;  %v1426_v5 = vmul.f32 0.25, %v1417_v3  ;;  %v1428_v6 = vld [vmem:[%s346_s15] sm:$0xff]  ;;  %v1436_v8 = vld [vmem:[%s356_s16] sm:$0xff]  ;;  %s407_s23 = scalar_lea.vmem [#allocation10], %s1384_s10  ;;  %s692_s29 = scalar_lea.sflag [#allocation4], %s1384_s10 }
  0x68   : > { %s409_s19 = scalar_select %p408_p13, %s1254_s25, 1  ;;  %511 = vmax.xlane.f32.xlu2 %v1417_v3  ;;  %v1434_v7 = vmul.f32 0.25, %v1428_v6  ;;  %v1474_v30 = vmul.f32 0.25, %v1436_v8  ;;  %v1485_v43 = vand.u32 127, %v420_v41 }
  0x69   : > { %480 = vmax.xlane.f32.xlu0 %v1421_v4 }
  0x6a   : > { %s876_s27 = sshll.u32 %s409_s19, 3  ;;  %vm675_vm7 = vcmp.eq.s32.totalorder %v1485_v43, 0  ;;  %vm678_vm8 = vcmp.eq.s32.totalorder %v1485_v43, 1  ;;  %vm682_vm9 = vcmp.eq.s32.totalorder %v1485_v43, 2  ;;  %s700_s19 = scalar_lea.hbm %s1596_s6, %s1254_s25  ;;  %vm686_vm10 = vcmp.eq.s32.totalorder %v1485_v43, 3 }
  0x6b   : > { %s415_s14 = scalar_lea.vmem %s1591_s1, %s876_s27  ;;  %s411_s9 = scalar_lea.vmem %s1590_s0, %s876_s27 }
  0x6c   : > { %v1413_v1 = vld [vmem:[%s415_s14] sm:$0xff]  ;;  %s702_s14 = sshll.u32 %s407_s23, 4  ;;  %s704_s7 = sshll.u32 %s700_s19, 4  ;;  %s703_s14 = int_to_ptr.vmem [resolvable:$true] %s702_s14  ;;  %s705_s7 = int_to_ptr.hbm [resolvable:$true] %s704_s7 }
  0x6d   : > { %428 = vmax.xlane.f32.xlu1 %v1413_v1  ;;  %v1443_v9 = vld [vmem:[%s411_s9] sm:$0xff]  ;;  %s1134_s25 = sshra.s32 %s705_s7, 4  ;;  %s1135_s25 = int_to_ptr.hbm [resolvable:$true] %s1134_s25 }
  0x6e   : > { %vm417_vm5 = vcmp.ge.s32.totalorder %v1443_v9, 0  ;;  %s1136_s9 = scalar_lea.hbm %s1135_s25, 1  ;;  %p1141_p4 = scmp.lt.s32.totalorder %s1135_s25, %s1596_s6 }
  0x6f   : > { %p1137_p6 = scmp.ne.s32.totalorder %s1135_s25, %s1136_s9 }
  0x70   : > { %538 = vmax.xlane.f32.xlu2 %v1426_v5 }
  0x71   : > { %566 = vmax.xlane.f32.xlu0 %v1428_v6  ;;  %p1138_p2 = pnand %p1137_p6, %p1279_p11 }
  0x73   : > { %p1139_p3 = pneg %p1138_p2 }
  0x75   : > { %454 = vmax.xlane.f32.xlu1 %v1415_v2 }
  0x78   : > { %621 = vmax.xlane.f32.xlu2 %v1436_v8 }
  0x7d   : > { %593 = vmax.xlane.f32.xlu1 %v1434_v7 }
  0x96   : > { %423 = vperm.xlu1 %960, %v1443_v9  }
  0xdb   : > { %v1448_v11 = vpop.xlane.xlu2 %511 }
  0xdc   : > { %v1452_v13 = vpop.xlane.xlu0 %480  ;;  %v513_v16 = vsub.f32 %v1417_v3, %v1448_v11 }
  0xdd   : > { %v482_v15 = vsub.f32 %v1421_v4, %v1452_v13 }
  0xde   : > { %v514_v18 = vmul.f32 1.442695, %v513_v16 }
  0xdf   : > { %v483_v17 = vmul.f32 1.442695, %v482_v15 }
  0xe0   : > { %v1446_v10 = vpop.xlane.xlu1 %428 }
  0xe1   : > { %v430_v12 = vsub.f32 %v1413_v1, %v1446_v10 }
  0xe3   : > { %v431_v14 = vmul.f32 1.442695, %v430_v12  ;;  %v1458_v19 = vpop.xlane.xlu2 %538 }
  0xe4   : > { %v1460_v20 = vpop.xlane.xlu0 %566  ;;  %v540_v32 = vsub.f32 %v1426_v5, %v1458_v19 }
  0xe5   : > { %962 = vpow2.f32 %v431_v14  ;;  %v568_v23 = vsub.f32 %v1428_v6, %v1460_v20 }
  0xe6   : > { %964 = vpow2.f32 %v483_v17  ;;  %v541_v35 = vmul.f32 1.442695, %v540_v32 }
  0xe7   : > { %966 = vpow2.f32 %v514_v18  ;;  %v569_v26 = vmul.f32 1.442695, %v568_v23 }
  0xe8   : > { %v1462_v21 = vpop.xlane.xlu1 %454 }
  0xe9   : > { %v456_v25 = vsub.f32 %v1415_v2, %v1462_v21  ;;  %968 = vpow2.f32 %v569_v26 }
  0xeb   : > { %v963_v22 = vpop.eup %962  ;;  %v1471_v27 = vpop.xlane.xlu2 %621  ;;  %v457_v29 = vmul.f32 1.442695, %v456_v25 }
  0xec   : > { %433 = vadd.xlane.f32.xlu2 %v963_v22  ;;  %v1466_v24 = vpop.eup %964  ;;  %v623_v31 = vsub.f32 %v1436_v8, %v1471_v27 }
  0xed   : > { %485 = vadd.xlane.f32.xlu0 %v1466_v24  ;;  %v967_v28 = vpop.eup %966  ;;  %970 = vpow2.f32 %v457_v29 }
  0xee   : > { %v624_v33 = vmul.f32 1.442695, %v623_v31 }
  0xef   : > { %v969_v34 = vpop.eup %968 }
  0xf0   : > { %v1481_v36 = vpop.xlane.xlu1 %593  ;;  %972 = vpow2.f32 %v624_v33 }
  0xf1   : > { %974 = vpow2.f32 %v541_v35  ;;  %v595_v38 = vsub.f32 %v1434_v7, %v1481_v36 }
  0xf3   : > { %v971_v37 = vpop.eup %970  ;;  %v596_v40 = vmul.f32 1.442695, %v595_v38 }
  0xf4   : > { %516 = vadd.xlane.f32.xlu2 %v967_v28 }
  0xf5   : > { %648 = vmax.xlane.f32.xlu0 %v1474_v30  ;;  %976 = vpow2.f32 %v596_v40 }
  0xf6   : > { %v973_v39 = vpop.eup %972 }
  0xf7   : > { %v975_v42 = vpop.eup %974 }
  0xfb   : > { %v977_v47 = vpop.eup %976 }
  0xfc   : > { %571 = vadd.xlane.f32.xlu2 %v969_v34 }
  0xfd   : > { %459 = vadd.xlane.f32.xlu0 %v971_v37 }
 0x104   : > { %626 = vadd.xlane.f32.xlu2 %v973_v39 }
 0x105   : > { %543 = vadd.xlane.f32.xlu0 %v975_v42 }
 0x108   : > { %v424_v44 = vpop.permute.xlu1 %423 }
 0x109   : > { %vm1488_vm0 = vcmp.eq.s32.totalorder %v1485_v43, %v424_v44 }
 0x10a   : > { %v464_v46 = vsel %vm1488_vm0, %v1415_v2, 0.0  ;;  %v576_v48 = vsel %vm1488_vm0, %v1428_v6, 0.0  ;;  %v438_v49 = vsel %vm1488_vm0, %v1413_v1, 0.0  ;;  %v521_v50 = vsel %vm1488_vm0, %v1417_v3, 0.0 }
 0x10c   : > { %465 = vadd.xlane.f32.xlu2 %v464_v46 }
 0x10d   : > { %598 = vadd.xlane.f32.xlu0 %v977_v47 }
 0x114   : > { %577 = vadd.xlane.f32.xlu2 %v576_v48 }
 0x115   : > { %439 = vadd.xlane.f32.xlu0 %v438_v49 }
 0x11d   : > { %522 = vadd.xlane.f32.xlu0 %v521_v50 }
 0x15f   : > { %v434_v51 = vpop.xlane.xlu2 %433 }
 0x160   : > { %v1504_v52 = vpop.xlane.xlu0 %485 }
 0x161   : > { %978 = vrcp.f32 %v1504_v52  ;;  %v498_v59 = vand.u32 2147483648, %v1504_v52  ;;  %v496_v62 = vand.u32 2147483647, %v1504_v52  ;;  %vm492_vm2 = vweird.f32 %v1504_v52 }
 0x163   : > { %v499_v1 = vor.u32 1.1754944e-38, %v498_v59  ;;  %vm497_vm4 = vcmp.eq.f32.partialorder %v496_v62, 8.507059e+37 }
 0x167   : > { %v517_v53 = vpop.xlane.xlu2 %516  ;;  %v979_v54 = vpop.eup %978 }
 0x168   : > { %v488_v55 = vmul.f32 %v979_v54, %v1504_v52  ;;  %v1508_v56 = vpop.xlane.xlu0 %648  ;;  %vm493_vm1 = vweird.f32 %v979_v54 }
 0x169   : > { %v650_v57 = vsub.f32 %v1474_v30, %v1508_v56  ;;  %vm494_vm3 = vmor %vm492_vm2, %vm493_vm1 }
 0x16a   : > { %v489_v58 = vsub.f32 1.0, %v488_v55 }
 0x16b   : > { %v651_v60 = vmul.f32 1.442695, %v650_v57 }
 0x16c   : > { %v490_v61 = vmul.f32 %v979_v54, %v489_v58 }
 0x16d   : > { %980 = vpow2.f32 %v651_v60 }
 0x16e   : > { %v491_v63 = vadd.f32 %v979_v54, %v490_v61 }
 0x16f   : > { %v572_v0 = vpop.xlane.xlu2 %571 }
 0x170   : > { %v460_v2 = vpop.xlane.xlu0 %459  ;;  %v495_v3 = vsel %vm494_vm3, %v979_v54, %v491_v63 }
 0x171   : > { %982 = vlog2.f32 %v460_v2  ;;  %v500_v6 = vsel %vm497_vm4, %v499_v1, %v495_v3 }
 0x172   : > { %v502_v12 = vmul.f32 %v1466_v24, %v500_v6  ;;  %984 = vlog2.f32 %v572_v0  ;;  %v631_v24 = vsel %vm1488_vm0, %v1436_v8, 0.0 }
 0x173   : > { %v981_v14 = vpop.eup %980  ;;  %986 = vlog2.f32 %v434_v51 }
 0x174   : > { %653 = vadd.xlane.f32.xlu1 %v981_v14  ;;  %v548_v15 = vmul.f32 %v1426_v5, %v502_v12  ;;  %v506_v16 = vmul.f32 %v502_v12, %v1421_v4  ;;  %v603_v25 = vmul.f32 %v1434_v7, %v502_v12  ;;  %v1197_v4 = vmov 0.0  }
 0x175   : > { %v1524_v28 = vsel %vm417_vm5, 1.0, %v1197_v4  ;;  %988 = vlog2.f32 %v517_v53 }
 0x176   : > { %549 = vadd.xlane.f32.xlu2 %v548_v15  ;;  %507 = vadd.xlane.f32.xlu0 %v506_v16  ;;  %990 = vlog2.f32 %v1504_v52 }
 0x177   : > { %v627_v17 = vpop.xlane.xlu2 %626  ;;  %v983_v18 = vpop.eup %982 }
 0x178   : > { %v544_v22 = vpop.xlane.xlu0 %543  ;;  %v462_v23 = vmul.f32 0.6931472, %v983_v18  ;;  %v985_v26 = vpop.eup %984 }
 0x179   : > { %v987_v32 = vpop.eup %986  ;;  %v574_v9 = vmul.f32 0.6931472, %v985_v26  ;;  %992 = vlog2.f32 %v544_v22 }
 0x17a   : > { %v463_v5 = vadd.f32 %v462_v23, %v1462_v21  ;;  %v436_v34 = vmul.f32 0.6931472, %v987_v32  ;;  %v658_v21 = vmul.f32 %v1474_v30, %v502_v12  ;;  %994 = vlog2.f32 %v627_v17 }
 0x17b   : > { %v575_v35 = vadd.f32 %v574_v9, %v1460_v20  ;;  %v989_v40 = vpop.eup %988 }
 0x17c   : > { %v437_v39 = vadd.f32 %v436_v34, %v1446_v10  ;;  %v519_v45 = vmul.f32 0.6931472, %v989_v40  ;;  %v991_v51 = vpop.eup %990 }
 0x17d   : > { %v504_v53 = vmul.f32 0.6931472, %v991_v51 }
 0x17e   : > { %632 = vadd.xlane.f32.xlu2 %v631_v24  ;;  %604 = vadd.xlane.f32.xlu0 %v603_v25  ;;  %v520_v20 = vadd.f32 %v519_v45, %v1448_v11 }
 0x17f   : > { %v466_v29 = vpop.xlane.xlu2 %465  ;;  %v993_v54 = vpop.eup %992  ;;  %v505_v57 = vadd.f32 %v504_v53, %v1452_v13 }
 0x180   : > { %v467_v31 = vsub.f32 %v463_v5, %v466_v29  ;;  %v599_v33 = vpop.xlane.xlu0 %598  ;;  %v546_v55 = vmul.f32 0.6931472, %v993_v54  ;;  %v995_v58 = vpop.eup %994 }
 0x181   : > { %996 = vlog2.f32 %v599_v33  ;;  %v629_v63 = vmul.f32 0.6931472, %v995_v58 }
 0x182   : > { %v468_v7 = vmul.f32 %v1524_v28, %v467_v31  ;;  %v547_v0 = vadd.f32 %v546_v55, %v1458_v19 }
 0x183   : > { %v630_v3 = vadd.f32 %v629_v63, %v1471_v27 }
 0x184   : > { %v469_v8 = vsel %vm443_vm6, %v468_v7, 0.0 }
 0x185   : > { %470 = vadd.xlane.f32.xlu1 %v469_v8 }
 0x186   : > { %659 = vadd.xlane.f32.xlu0 %v658_v21 }
 0x187   : > { %v578_v37 = vpop.xlane.xlu2 %577  ;;  %v997_v62 = vpop.eup %996 }
 0x188   : > { %v579_v38 = vsub.f32 %v575_v35, %v578_v37  ;;  %v440_v41 = vpop.xlane.xlu0 %439  ;;  %v601_v52 = vmul.f32 0.6931472, %v997_v62 }
 0x189   : > { %v441_v42 = vsub.f32 %v437_v39, %v440_v41 }
 0x18a   : > { %v580_v44 = vmul.f32 %v1524_v28, %v579_v38  ;;  %v602_v13 = vadd.f32 %v601_v52, %v1481_v36 }
 0x18b   : > { %v442_v47 = vmul.f32 %v1524_v28, %v441_v42 }
 0x18c   : > { %v581_v46 = vsel %vm443_vm6, %v580_v44, 0.0 }
 0x18d   : > { %582 = vadd.xlane.f32.xlu1 %v581_v46  ;;  %v444_v30 = vsel %vm443_vm6, %v442_v47, 0.0 }
 0x18e   : > { %445 = vadd.xlane.f32.xlu2 %v444_v30 }
 0x190   : > { %v523_v48 = vpop.xlane.xlu0 %522 }
 0x191   : > { %v524_v49 = vsub.f32 %v520_v20, %v523_v48 }
 0x193   : > { %v525_v10 = vmul.f32 %v1524_v28, %v524_v49 }
 0x195   : > { %v526_v50 = vsel %vm443_vm6, %v525_v10, 0.0 }
 0x196   : > { %527 = vadd.xlane.f32.xlu0 %v526_v50 }
 0x1e7   : > { %v654_v60 = vpop.xlane.xlu1 %653 }
 0x1e8   : > { %998 = vlog2.f32 %v654_v60 }
 0x1e9   : > { %v550_v11 = vpop.xlane.xlu2 %549  ;;  %v508_v59 = vpop.xlane.xlu0 %507 }
 0x1ea   : > { %v509_v61 = vsub.f32 %v508_v59, %v505_v57 }
 0x1ec   : > { %v551_v1 = vsub.f32 %v509_v61, %v550_v11 }
 0x1ee   : > { %v552_v2 = vadd.f32 %v551_v1, %v547_v0  ;;  %v999_v18 = vpop.eup %998 }
 0x1ef   : > { %v656_v19 = vmul.f32 0.6931472, %v999_v18 }
 0x1f0   : > { %v553_v6 = vmul.f32 %v1524_v28, %v552_v2 }
 0x1f1   : > { %v633_v12 = vpop.xlane.xlu2 %632  ;;  %v605_v14 = vpop.xlane.xlu0 %604  ;;  %v657_v36 = vadd.f32 %v656_v19, %v1508_v56 }
 0x1f2   : > { %v634_v15 = vsub.f32 %v630_v3, %v633_v12  ;;  %v606_v16 = vsub.f32 %v509_v61, %v605_v14  ;;  %v554_v17 = vsel %vm443_vm6, %v553_v6, 0.0 }
 0x1f3   : > { %555 = vadd.xlane.f32.xlu2 %v554_v17 }
 0x1f4   : > { %v607_v22 = vadd.f32 %v606_v16, %v602_v13  ;;  %v635_v25 = vmul.f32 %v1524_v28, %v634_v15 }
 0x1f6   : > { %v608_v23 = vmul.f32 %v1524_v28, %v607_v22  ;;  %v636_v29 = vsel %vm443_vm6, %v635_v25, 0.0 }
 0x1f8   : > { %v471_v24 = vpop.xlane.xlu1 %470  ;;  %v609_v27 = vsel %vm443_vm6, %v608_v23, 0.0 }
 0x1f9   : > { %v472_v5 = vrot.slane %v471_v24, 4  ;;  %v660_v26 = vpop.xlane.xlu0 %659  ;;  %610 = vadd.xlane.f32.xlu0 %v609_v27 }
 0x1fa   : > { %v661_v4 = vsub.f32 %v509_v61, %v660_v26 }
 0x1fb   : > { %637 = vadd.xlane.f32.xlu2 %v636_v29  ;;  %v473_v32 = vadd.f32 %v472_v5, %v471_v24 }
 0x1fc   : > { %v662_v31 = vadd.f32 %v661_v4, %v657_v36 }
 0x1fd   : > { %v474_v7 = vrot.slane %v473_v32, 2 }
 0x1fe   : > { %v663_v33 = vmul.f32 %v1524_v28, %v662_v31 }
 0x1ff   : > { %v475_v35 = vadd.f32 %v474_v7, %v473_v32 }
 0x200   : > { %v664_v9 = vsel %vm443_vm6, %v663_v33, 0.0  ;;  %v583_v20 = vpop.xlane.xlu1 %582 }
 0x201   : > { %665 = vadd.xlane.f32.xlu1 %v664_v9  ;;  %v446_v34 = vpop.xlane.xlu2 %445  ;;  %v476_v56 = vrot.slane %v475_v35, 1  ;;  %v584_v48 = vrot.slane %v583_v20, 4 }
 0x202   : > { %v447_v8 = vrot.slane %v446_v34, 4 }
 0x203   : > { %v477_v45 = vadd.f32 %v476_v56, %v475_v35  ;;  %v585_v49 = vadd.f32 %v584_v48, %v583_v20 }
 0x204   : > { %v448_v21 = vadd.f32 %v447_v8, %v446_v34 }
 0x205   : > { %v586_v10 = vrot.slane %v585_v49, 2 }
 0x206   : > { %v449_v37 = vrot.slane %v448_v21, 2 }
 0x207   : > { %v587_v54 = vadd.f32 %v586_v10, %v585_v49 }
 0x208   : > { %v450_v38 = vadd.f32 %v449_v37, %v448_v21 }
 0x209   : > { %v528_v39 = vpop.xlane.xlu0 %527  ;;  %v588_v60 = vrot.slane %v587_v54, 1 }
 0x20a   : > { %v529_v40 = vrot.slane %v528_v39, 4  ;;  %v451_v41 = vrot.slane %v450_v38, 1 }
 0x20b   : > { %v589_v2 = vadd.f32 %v588_v60, %v587_v54 }
 0x20c   : > { %v530_v42 = vadd.f32 %v529_v40, %v528_v39  ;;  %v452_v44 = vadd.f32 %v451_v41, %v450_v38 }
 0x20e   : > { %v531_v46 = vrot.slane %v530_v42, 2  ;;  %881 = vpush %v452_v44 }
 0x20f   : > { %883 = vpush %v477_v45 }
 0x210   : > { %v532_v28 = vadd.f32 %v531_v46, %v530_v42 }
 0x212   : > { %v533_v47 = vrot.slane %v532_v28, 1 }
 0x214   : > { %v534_v30 = vadd.f32 %v533_v47, %v532_v28 }
 0x216   : > { %885 = vpush %v534_v30 }
 0x23f   : > { %s882_s26 = spop %881 }
 0x240   : > { %s884_s20 = spop %883  ;;  %v676_v27 = vstv %s882_s26 }
 0x241   : > { %v679_v5 = vstv %s884_s20  ;;  %v677_v36 = vsel %vm675_vm7, %v676_v27, 0.0 }
 0x242   : > { %v680_v4 = vsel %vm678_vm8, %v679_v5, 0.0 }
 0x243   : > { %v681_v31 = vadd.f32 %v680_v4, %v677_v36 }
 0x247   : > { %s886_s11 = spop %885 }
 0x266   : > { %v556_v50 = vpop.xlane.xlu2 %555 }
 0x267   : > { %v557_v51 = vrot.slane %v556_v50, 4 }
 0x269   : > { %v558_v53 = vadd.f32 %v557_v51, %v556_v50 }
 0x26b   : > { %v559_v55 = vrot.slane %v558_v53, 2 }
 0x26c   : > { %v611_v57 = vpop.xlane.xlu0 %610 }
 0x26d   : > { %v612_v58 = vrot.slane %v611_v57, 4  ;;  %v560_v11 = vadd.f32 %v559_v55, %v558_v53 }
 0x26e   : > { %v638_v59 = vpop.xlane.xlu2 %637 }
 0x26f   : > { %v613_v61 = vadd.f32 %v612_v58, %v611_v57  ;;  %v639_v62 = vrot.slane %v638_v59, 4  ;;  %v561_v63 = vrot.slane %v560_v11, 1 }
 0x271   : > { %v614_v0 = vrot.slane %v613_v61, 2  ;;  %v640_v1 = vadd.f32 %v639_v62, %v638_v59  ;;  %v562_v52 = vadd.f32 %v561_v63, %v560_v11 }
 0x273   : > { %v615_v3 = vadd.f32 %v614_v0, %v613_v61  ;;  %v641_v6 = vrot.slane %v640_v1, 2  ;;  %887 = vpush %v562_v52 }
 0x274   : > { %889 = vpush %v589_v2  ;;  %v666_v12 = vpop.xlane.xlu1 %665 }
 0x275   : > { %v642_v14 = vadd.f32 %v641_v6, %v640_v1  ;;  %v667_v13 = vrot.slane %v666_v12, 4  ;;  %v616_v15 = vrot.slane %v615_v3, 1 }
 0x277   : > { %v668_v16 = vadd.f32 %v667_v13, %v666_v12  ;;  %v617_v17 = vadd.f32 %v616_v15, %v615_v3  ;;  %v643_v18 = vrot.slane %v642_v14, 1 }
 0x279   : > { %v669_v22 = vrot.slane %v668_v16, 2  ;;  %891 = vpush %v617_v17  ;;  %v644_v19 = vadd.f32 %v643_v18, %v642_v14 }
 0x27b   : > { %v670_v23 = vadd.f32 %v669_v22, %v668_v16  ;;  %893 = vpush %v644_v19 }
 0x27d   : > { %v671_v25 = vrot.slane %v670_v23, 1 }
 0x27f   : > { %v672_v24 = vadd.f32 %v671_v25, %v670_v23 }
 0x281   : > { %895 = vpush %v672_v24 }
 0x2a4   : > { %s888_s12 = spop %887 }
 0x2a5   : > { %s890_s18 = spop %889 }
 0x2a6   : > { %s591_s17 = sadd.f32 %s890_s18, %s886_s11  ;;  %s1140_s11 = scalar_lea.hbm %s1596_s6, 2 }
 0x2a7   : > { %p1142_p5 = scmp.lt.s32.totalorder %s1140_s11, %s1136_s9 }
 0x2a9   : > { %p1143_p7 = por %p1142_p5, %p1141_p4 }
 0x2aa   : > { %s892_s13 = spop %891 }
 0x2ab   : > { %s619_s15 = sadd.f32 %s892_s13, %s888_s12  ;;  %p1144_p0 = pnand %p1143_p7, %p1139_p3 }
 0x2ac   : > { %s894_s28 = spop %893 }
 0x2ad   : > { %s646_s24 = sadd.f32 %s894_s28, %s591_s17 }
 0x2af   : > { %v683_v26 = vstv %s646_s24 }
 0x2b0   : > { %v684_v29 = vsel %vm682_vm9, %v683_v26, 0.0 }
 0x2b1   : > { %v685_v32 = vadd.f32 %v684_v29, %v681_v31 }
 0x2b2   : > { %s896_s27 = spop %895 }
 0x2b3   : > { %s674_s3 = sadd.f32 %s896_s27, %s619_s15 }
 0x2b5   : > { %v687_v33 = vstv %s674_s3 }
 0x2b6   : > { %v688_v9 = vsel %vm686_vm10, %v687_v33, 0.0 }
 0x2b7   : > { %v689_v7 = vadd.f32 %v688_v9, %v685_v32 }
 0x2b9   : > { %690 = vst [vmem:[%s407_s23] sm:$0x1] %v689_v7 }
 0x2ba   : > { %1147 = shalt.err (!%p1144_p0)
}
 0x2bb   : > { %905 = dma.vmem_to_hbm [thread:$0]  (%p1279_p11), %s703_s14, 16, %s705_s7, %s692_s29  }
 0x2bc PF: > { %s716_s13 = sand.u32 1, %s1182_s21   ;;  %p921_p8 = pnand %p862_p9, %p1283_p12 }
 0x2bd   : > { %s717_s28 = scalar_lea.sflag [#allocation4], %s716_s13 }
 0x2be   : > { %p922_p10 = pneg %p921_p8 }
 0x2c0   : > { %1177 = dma.done.wait (%p922_p10), %s717_s28, 16  }
 0x2c1   : > { %1179 = vsyncadd (%p922_p10), %s717_s28, 4294967280  ;;  %s1618_s24 = sld [smem:[#allocation17_spill]]  ;;  %s1621_s21 = smov %s1186_s22 }
 0x2c2   : > { %s1619_s15 = sld [smem:[#allocation15_spill]] }
 0x2c3   : > { %s1620_s23 = sld [smem:[#allocation18_spill]] }
 0x2c7   : > { %p25_p1 = scmp.ge.s32.totalorder %s1618_s24, 4  }
 0x2c8   : > { %s1622_s22 = smov %s1619_s15 }
 0x2c9   :  { %27 = sbr.rel (!%p25_p1) target bundleno = 11 (0xb), region = 132 }
 0x2ce   :  { %722 = vsyncpa [#allocation3], 1 }
 0x2cf   :  { %724 = vsyncpa [#allocation3 + $0x1], 1 }
 0x2d0   :  { %725 = vsyncpa [#allocation6], 1 }
 0x2d1   :  { %727 = vsyncpa [#allocation6 + $0x1], 1 }
 0x2d2   :  { %728 = vsyncpa [#allocation9], 1 }
 0x2d3   :  { %730 = vsyncpa [#allocation9 + $0x1], 1 }
 0x2d4   :  { %731 = vsyncpa [#allocation4], 1 }
 0x2d5   :  { %733 = vsyncpa [#allocation4 + $0x1], 1 }

</bundles_post_ra>
